<compile_context>
chip_gen: v7x
topology: tpu7x:2x2x1
jax: 0.10.0
libtpu: 0.0.40
codegen_flags: <defaults>
</compile_context>

<pallas_src>
import functools

import jax
import jax.numpy as jnp
from jax.experimental import pallas as pl
from jax.experimental.pallas import tpu as pltpu


def _round_up(x, m):
    return ((x + m - 1) // m) * m


# --------------------------------------------------------------- kernel 1 ---
def _input_proj_kernel(x_ref, w_ref, b_ref, o_ref):
    """One row tile of gi = x @ W_ih^T + b_ih (bf16 MXU, f32 acc, bf16 out)."""
    acc = jnp.dot(x_ref[...], w_ref[...], preferred_element_type=jnp.float32)
    o_ref[...] = (acc + b_ref[...]).astype(o_ref.dtype)


# --------------------------------------------------------------- kernel 2 ---
def _gru_recurrence_kernel(gi_ref, whh_ref, bhh_ref, out_ref, h_scr, *, unroll):
    """GRU recurrence over one (Tc, Bc) chunk; h carried in VMEM scratch.

    gi_ref : (Tc, Bc, 3H) bf16 -- precomputed x_t @ W_ih^T + b_ih
    whh_ref: (H, 3H)      bf16 -- fused W_hh^T  (columns: [r | z | n])
    bhh_ref: (1, 3H)      f32  -- fused b_hh
    out_ref: (Tc, Bc, H)  f32  -- h_t for every step in the chunk
    h_scr  : (Bc, H)      f32  -- hidden state carried across T-chunks
    """
    H = whh_ref.shape[0]
    tc = gi_ref.shape[0]

    @pl.when(pl.program_id(1) == 0)            # new batch chunk -> h0 = 0
    def _():
        h_scr[...] = jnp.zeros_like(h_scr)

    def step(t, h):
        gi_t = gi_ref[t].astype(jnp.float32)                     # (Bc, 3H)
        gh = (jnp.dot(h.astype(jnp.bfloat16), whh_ref[...],     # one MXU push
                      preferred_element_type=jnp.float32)
              + bhh_ref[...])                                    # (Bc, 3H)
        r = jax.nn.sigmoid(gi_t[:, :H] + gh[:, :H])
        z = jax.nn.sigmoid(gi_t[:, H:2 * H] + gh[:, H:2 * H])
        n = jnp.tanh(gi_t[:, 2 * H:] + r * gh[:, 2 * H:])
        h_new = (1.0 - z) * n + z * h                            # f32 path
        out_ref[t] = h_new.astype(out_ref.dtype)
        return h_new

    h_final = jax.lax.fori_loop(0, tc, step, h_scr[...], unroll=unroll)
    h_scr[...] = h_final


# ---------------------------------------------------------------- wrapper ---
def encoder_forward(ids, emb_table, w_ih, w_hh, b_ih, b_hh,
                    *, tm=512, tc=32, bc=None):
    """ids: (T, B) int32.  PyTorch layouts: emb (V, H), w_* (3H, H), b_* (3H,)."""
    T, B = ids.shape
    V, H = emb_table.shape

    # ---- pad T so the recurrence T-chunk grid divides evenly ----------------
    tc = max(1, min(tc, T))
    T_pad = _round_up(T, tc)
    if T_pad != T:
        ids = jnp.pad(ids, ((0, T_pad - T), (0, 0)))       # token 0 is valid

    # ---- batch chunking (only when it keeps sublane alignment) --------------
    if bc is None or bc <= 0 or B % bc != 0 or (bc != B and bc % 8 != 0):
        bc = B
    grid_b = B // bc

    # ---- hoisted embedding gather, directly in bf16 -------------------------
    x = jnp.take(emb_table.astype(jnp.bfloat16), ids.reshape(-1), axis=0)

    rows = T_pad * B
    tm = min(tm, _round_up(rows, 8))
    rows_pad = _round_up(rows, tm)
    if rows_pad != rows:
        x = jnp.pad(x, ((0, rows_pad - rows), (0, 0)))

    wih_t = jnp.transpose(w_ih).astype(jnp.bfloat16)             # (H, 3H)
    bih = b_ih.reshape(1, 3 * H).astype(jnp.float32)

    flops = 2 * rows_pad * H * 3 * H
    bytes_acc = (rows_pad * H + H * 3 * H + rows_pad * 3 * H) * 2 + 3 * H * 4

    gi_flat = pl.pallas_call(
        _input_proj_kernel,
        out_shape=jax.ShapeDtypeStruct((rows_pad, 3 * H), jnp.bfloat16),
        grid_spec=pltpu.PrefetchScalarGridSpec(
            num_scalar_prefetch=0,
            grid=(rows_pad // tm,),
            in_specs=[
                pl.BlockSpec((tm, H), lambda i: (i, 0)),         # row tiles
                pl.BlockSpec((H, 3 * H), lambda i: (0, 0)),      # W_ih resident
                pl.BlockSpec((1, 3 * H), lambda i: (0, 0)),      # b_ih resident
            ],
            out_specs=pl.BlockSpec((tm, 3 * H), lambda i: (i, 0)),
        ),
        compiler_params=pltpu.CompilerParams(
            dimension_semantics=("parallel",),
            vmem_limit_bytes=32 * 1024 * 1024),
        cost_estimate=pl.CostEstimate(flops=flops, transcendentals=0,
                                      bytes_accessed=bytes_acc),
    )(x, wih_t, bih)

    # (rows_pad, 3H) -> (T_pad, B, 3H); metadata-only when rows_pad == rows.
    gi = gi_flat[:rows].reshape(T_pad, B, 3 * H)

    # Fused recurrent weights: W_hh^T (H, 3H) bf16, b_hh (1, 3H) f32.
    whh_t = jnp.transpose(w_hh).astype(jnp.bfloat16)
    bhh = b_hh.reshape(1, 3 * H).astype(jnp.float32)

    kernel2 = functools.partial(_gru_recurrence_kernel, unroll=min(8, tc))

    outputs_pad = pl.pallas_call(
        kernel2,
        out_shape=jax.ShapeDtypeStruct((T_pad, B, H), jnp.float32),
        grid_spec=pltpu.PrefetchScalarGridSpec(
            num_scalar_prefetch=0,
            grid=(grid_b, T_pad // tc),
            in_specs=[
                pl.BlockSpec((tc, bc, 3 * H), lambda b, t: (t, b, 0)),
                pl.BlockSpec((H, 3 * H), lambda b, t: (0, 0)),
                pl.BlockSpec((1, 3 * H), lambda b, t: (0, 0)),
            ],
            out_specs=pl.BlockSpec((tc, bc, H), lambda b, t: (t, b, 0)),
            scratch_shapes=[pltpu.VMEM((bc, H), jnp.float32)],   # carried h
        ),
        compiler_params=pltpu.CompilerParams(
            dimension_semantics=("parallel", "arbitrary"),
            vmem_limit_bytes=32 * 1024 * 1024),
    )(gi, whh_t, bhh)

    outputs = outputs_pad[:T]
    hidden = outputs[T - 1:T]                                    # (1, B, H)
    return outputs, hidden


# -------------------------------------------------------------- reference ---
def _reference_forward(ids, emb_table, w_ih, w_hh, b_ih, b_hh):
    """Pure-JAX f32 reference (mirrors torch nn.Embedding + nn.GRU)."""
    embedded = jnp.take(emb_table, ids, axis=0)                  # (T, B, H)

    def step(h, x_t):
        gi = x_t @ w_ih.T + b_ih
        gh = h @ w_hh.T + b_hh
        i_r, i_z, i_n = jnp.split(gi, 3, axis=-1)
        h_r, h_z, h_n = jnp.split(gh, 3, axis=-1)
        r = jax.nn.sigmoid(i_r + h_r)
        z = jax.nn.sigmoid(i_z + h_z)
        n = jnp.tanh(i_n + r * h_n)
        h_new = (1.0 - z) * n + z * h
        return h_new, h_new

    B = ids.shape[1]
    H = emb_table.shape[1]
    h0 = jnp.zeros((B, H), jnp.float32)
    h_last, outs = jax.lax.scan(step, h0, embedded)
    return outs, h_last[None]


if __name__ == "__main__":
    # Small deterministic config.
    input_size, hidden_size = 20, 32     # vocab V, hidden H
    T, B = 8, 2                          # seq len, batch

    key = jax.random.PRNGKey(0)
    k_ids, k_emb, k_wih, k_whh, k_bih, k_bhh = jax.random.split(key, 6)

    bound = 1.0 / (hidden_size ** 0.5)   # PyTorch-style uniform init bound
    ids = jax.random.randint(k_ids, (T, B), 0, input_size, dtype=jnp.int32)
    emb_table = jax.random.uniform(k_emb, (input_size, hidden_size),
                                   jnp.float32, -1.0, 1.0)
    w_ih = jax.random.uniform(k_wih, (3 * hidden_size, hidden_size),
                              jnp.float32, -bound, bound)
    w_hh = jax.random.uniform(k_whh, (3 * hidden_size, hidden_size),
                              jnp.float32, -bound, bound)
    b_ih = jax.random.uniform(k_bih, (3 * hidden_size,), jnp.float32, -bound, bound)
    b_hh = jax.random.uniform(k_bhh, (3 * hidden_size,), jnp.float32, -bound, bound)

    # tc=4 exercises the T-chunked recurrence (h carried in VMEM scratch).
    outputs, hidden = encoder_forward(ids, emb_table, w_ih, w_hh, b_ih, b_hh,
                                      tm=512, tc=4)
    jax.block_until_ready((outputs, hidden))

    ref_out, ref_hid = _reference_forward(ids, emb_table, w_ih, w_hh, b_ih, b_hh)
    assert outputs.shape == (T, B, hidden_size)
    assert hidden.shape == (1, B, hidden_size)
    # bf16 matmul operands + bf16 gi storage (f32 accumulation / gate math)
    # vs an all-f32 reference -> loose tolerance.
    assert jnp.allclose(outputs, ref_out, atol=5e-2, rtol=5e-2)
    assert jnp.allclose(hidden, ref_hid, atol=5e-2, rtol=5e-2)

    print("KERNEL_OK")
</pallas_src>

<mosaic_0001>
module attributes {stable_mosaic.version = 11 : i64} {
  func.func @_input_proj_kernel(%arg0: i32, %arg1: memref<16x32xbf16, #tpu.memory_space<vmem>>, %arg2: memref<32x96xbf16, #tpu.memory_space<vmem>>, %arg3: memref<1x96xf32, #tpu.memory_space<vmem>>, %arg4: memref<16x96xbf16, #tpu.memory_space<vmem>>) attributes {dimension_semantics = [#tpu.dimension_semantics<parallel>], iteration_bounds = array<i64: 1>, scalar_prefetch = 0 : i64, scratch_operands = 0 : i64, tpu.core_type = #tpu.core_type<tc>, window_params = [{transform_indices = @transform_0, window_bounds = array<i64: 16, 32>}, {pipeline_mode = #tpu.pipeline_mode<synchronous>, transform_indices = @transform_1, window_bounds = array<i64: 32, 96>}, {pipeline_mode = #tpu.pipeline_mode<synchronous>, transform_indices = @transform_2, window_bounds = array<i64: 1, 96>}, {transform_indices = @transform_3, window_bounds = array<i64: 16, 96>}]} {
    %c0 = arith.constant 0 : index
    %c0_0 = arith.constant 0 : index
    %0 = vector.load %arg1[%c0, %c0_0] : memref<16x32xbf16, #tpu.memory_space<vmem>>, vector<16x32xbf16>
    %c0_1 = arith.constant 0 : index
    %c0_2 = arith.constant 0 : index
    %1 = vector.load %arg2[%c0_1, %c0_2] : memref<32x96xbf16, #tpu.memory_space<vmem>>, vector<32x96xbf16>
    %cst = arith.constant dense<0.000000e+00> : vector<16x96xf32>
    %2 = tpu.matmul %0, %1, %cst {dimension_numbers = #tpu.dot_dimension_numbers<[1], [0], [0], [1], [0, 0, 1, 1], [], []>} : vector<16x32xbf16>, vector<32x96xbf16>, vector<16x96xf32> -> vector<16x96xf32>
    %c0_3 = arith.constant 0 : index
    %c0_4 = arith.constant 0 : index
    %3 = vector.load %arg3[%c0_3, %c0_4] : memref<1x96xf32, #tpu.memory_space<vmem>>, vector<1x96xf32>
    %4 = vector.broadcast %3 : vector<1x96xf32> to vector<16x96xf32>
    %5 = arith.addf %2, %4 : vector<16x96xf32>
    %6 = arith.truncf %5 : vector<16x96xf32> to vector<16x96xbf16>
    %c0_5 = arith.constant 0 : index
    %c0_6 = arith.constant 0 : index
    %7 = vector.load %arg4[%c0_5, %c0_6] : memref<16x96xbf16, #tpu.memory_space<vmem>>, vector<16x96xbf16>
    tpu.vector_store %arg4[%c0_5, %c0_6], %6 {strides = array<i32>} : memref<16x96xbf16, #tpu.memory_space<vmem>>, vector<16x96xbf16>,
    return
  }
  func.func @transform_0(%arg0: i32) -> (i32, i32) {
    %c0_i32 = arith.constant 0 : i32
    %c0_i32_0 = arith.constant 0 : i32
    return %arg0, %c0_i32 : i32, i32
  }
  func.func @transform_1(%arg0: i32) -> (i32, i32) {
    %c0_i32 = arith.constant 0 : i32
    %c0_i32_0 = arith.constant 0 : i32
    %c0_i32_1 = arith.constant 0 : i32
    return %c0_i32, %c0_i32_0 : i32, i32
  }
  func.func @transform_2(%arg0: i32) -> (i32, i32) {
    %c0_i32 = arith.constant 0 : i32
    %c0_i32_0 = arith.constant 0 : i32
    %c0_i32_1 = arith.constant 0 : i32
    return %c0_i32, %c0_i32_0 : i32, i32
  }
  func.func @transform_3(%arg0: i32) -> (i32, i32) {
    %c0_i32 = arith.constant 0 : i32
    %c0_i32_0 = arith.constant 0 : i32
    return %arg0, %c0_i32 : i32, i32
  }
}

</mosaic_0001>

<bundles_post_ra>
// kernel: tpu_custom_call.1
= control target key start
LH: loop header
LB: loop body
LE: loop exit
PB: predicated region body
PF: predicated region fallthrough
CT: control target
= control target key end

     0   :  { %8 = vsyncpa [#allocation3], 0  ;;  %s325_s0 = inlined_call_operand.hbm [shape: bf16[16,32], index: 0, kind: input, shape index: {}]   ;;  %s326_s1 = inlined_call_operand.hbm [shape: bf16[32,96], index: 1, kind: input, shape index: {}]   ;;  %s327_s2 = inlined_call_operand.vmem [shape: f32[1,96], index: 2, kind: input, shape index: {}]   ;;  %s328_s3 = inlined_call_operand.hbm [shape: bf16[16,96], index: 3, kind: output, shape index: {}]  }
   0x1   :  { %9 = vsyncpa [#allocation6], 0 }
   0x2   :  { %10 = vsyncpa [#allocation4], 0  ;;  %s250_s12 = smov [#allocation2]   ;;  %s178_s16 = scalar_lea.hbm %s325_s0, 128 }
   0x3   :  { %s16_s13 = sshll.u32 %s250_s12, 4  ;;  %p179_p0 = scmp.ne.s32.totalorder %s325_s0, %s178_s16  ;;  %s17_s13 = int_to_ptr.vmem [resolvable:$true] %s16_s13 }
   0x4   :  { %p182_p1 = scmp.lt.u32.totalorder %s178_s16, %s325_s0 }
   0x6   :  { %p184_p2 = pnand %p182_p1, %p179_p0 }
   0x8   :  { %187 = shalt.err (!%p184_p2)
}
   0x9   :  { %s188_s21 = scalar_lea.vmem %s17_s13, 128  ;;  %p193_p4 = scmp.lt.s32.totalorder %s17_s13, %s17_s13 }
   0xa   :  { %p189_p3 = scmp.ne.s32.totalorder %s17_s13, %s188_s21  ;;  %p194_p5 = scmp.lt.s32.totalorder %s188_s21, %s188_s21 }
   0xc   :  { %p195_p6 = por %p194_p5, %p193_p4 }
   0xe   :  { %p196_p7 = pnand %p195_p6, %p189_p3 }
  0x10   :  { %199 = shalt.err (!%p196_p7)
}
  0x11   :  { %s251_s22 = smov 64   ;;  %s252_s23 = smov 4  }
  0x12   :  { %22 = dma.hbm_to_vmem [thread:$0]  %s325_s0, 128, %s17_s13, [#allocation3], %s251_s22, %s251_s22, %s252_s23  }
  0x13   :  { %s253_s26 = smov [#allocation5]   ;;  %s200_s30 = scalar_lea.hbm %s326_s1, 256 }
  0x14   :  { %s28_s27 = sshll.u32 %s253_s26, 4  ;;  %p201_p8 = scmp.ne.s32.totalorder %s326_s1, %s200_s30  ;;  %s29_s27 = int_to_ptr.vmem [resolvable:$true] %s28_s27 }
  0x15   :  { %p204_p9 = scmp.lt.u32.totalorder %s200_s30, %s326_s1 }
  0x17   :  { %p206_p10 = pnand %p204_p9, %p201_p8 }
  0x19   :  { %209 = shalt.err (!%p206_p10)
}
  0x1a   :  { %s210_s8 = scalar_lea.vmem %s29_s27, 256  ;;  %p215_p12 = scmp.lt.s32.totalorder %s29_s27, %s29_s27 }
  0x1b   :  { %p211_p11 = scmp.ne.s32.totalorder %s29_s27, %s210_s8  ;;  %p216_p13 = scmp.lt.s32.totalorder %s210_s8, %s210_s8 }
  0x1d   :  { %p217_p0 = por %p216_p13, %p215_p12 }
  0x1f   :  { %p218_p1 = pnand %p217_p0, %p211_p11 }
  0x21   :  { %221 = shalt.err (!%p218_p1)
}
  0x22   :  { %34 = dma.hbm_to_vmem [thread:$0]  %s326_s1, 256, %s29_s27, [#allocation6], %s251_s22, %s251_s22, %s252_s23  }
  0x23   :  { %244 = dma.done.wait [#allocation3], 128  }
  0x24   :  { %245 = vsyncadd [#allocation3], 4294967168 }
  0x25   :  { %246 = dma.done.wait [#allocation6], 256  }
  0x26   :  { %247 = vsyncadd [#allocation6], 4294967040  ;;  %v254_v0 = vmov 0.0   ;;  %vm255_vm0 = vmmov 0   ;;  %v175_v1 = vld [vmem:[#allocation5] sm:$0xff]   ;;  %v176_v2 = vld [vmem:[#allocation5 + $0x8] sm:$0xff]  }
  0x27   :  { %160 = vmatprep.subr.bf16.mxu0 %v254_v0  ;;  %164 = vmatprep.mubr.msk.bf16.mxu0 %vm255_vm0, %v254_v0  ;;  %v177_v3 = vld [vmem:[#allocation2] sm:$0xff]   ;;  %vm74_vm1 = vcmask 261120   ;;  %vm127_vm2 = vcmask 781312   ;;  %s256_s1 = smov [#allocation7]  }
  0x28   :  { %161 = vmatpush3.bf16.msra.mxu0 %v175_v1  ;;  %v148_v4 = vld [vmem:[%s327_s2] ss:$0 sm:$0xff]  ;;  %s135_s12 = sshll.u32 %s256_s1, 4  ;;  %s136_s12 = int_to_ptr.vmem [resolvable:$true] %s135_s12 }
  0x29   :  { %162 = vmatprep.subr.bf16.mxu0 %v254_v0  ;;  %s222_s13 = scalar_lea.vmem %s136_s12, 128  ;;  %p227_p3 = scmp.lt.s32.totalorder %s136_s12, %s136_s12 }
  0x2a   :  { %p223_p2 = scmp.ne.s32.totalorder %s136_s12, %s222_s13  ;;  %p228_p4 = scmp.lt.s32.totalorder %s222_s13, %s222_s13 }
  0x2c   :  { %163 = vmatpush3.bf16.msra.mxu0 %v176_v2  ;;  %p229_p5 = por %p228_p4, %p227_p3 }
  0x2e   :  { %p230_p6 = pnand %p229_p5, %p223_p2 }
  0x2f   :  { %165 = vmatmul.mubr.msk.bf16.vlgmr.msra.gmra.mrb[0].mxu0 %vm74_vm1, %v177_v3 }
 0x102   :  { %v112_v5 = vpop.f32.mrb[0].mxu0 }
 0x103   :  { %v113_v6 = vadd.f32 %v148_v4, %v112_v5  ;;  %v166_v7 = vpop.f32.mrb[1].mxu0 }
 0x104   :  { %v115_v8 = vpop.f32.mrb[2].mxu0 }
 0x105   :  { %v155_v9 = vpack.c.bf16 %v113_v6, %v113_v6  ;;  %v116_v10 = vadd.f32 %v148_v4, %v115_v8  ;;  %v167_v11 = vpop.f32.mrb[3].mxu0 }
 0x107   :  { %v156_v12 = vpack.c.bf16 %v116_v10, %v116_v10  ;;  %128 = vst.msk [vmem:[#allocation7] sm:$0xf] %vm127_vm2, %v155_v9 }
 0x109   :  { %129 = vst.msk [vmem:[#allocation7 + $0x4] sm:$0xf] %vm127_vm2, %v156_v12 }
 0x10a   :  { %233 = shalt.err (!%p230_p6)
}
 0x10b   :  { %s234_s15 = scalar_lea.hbm %s328_s3, 128 }
 0x10c   :  { %p235_p7 = scmp.ne.s32.totalorder %s328_s3, %s234_s15  ;;  %p238_p8 = scmp.lt.u32.totalorder %s234_s15, %s328_s3 }
 0x10e   :  { %p240_p9 = pnand %p238_p8, %p235_p7 }
 0x110   :  { %243 = shalt.err (!%p240_p9)
}
 0x111   :  { %141 = dma.vmem_to_hbm [thread:$0]  %s136_s12, 128, %s328_s3, [#allocation4], %s251_s22, %s251_s22, %s252_s23  }
 0x112   :  { %248 = dma.done.wait [#allocation4], 128  }
 0x113   :  { %249 = vsyncadd [#allocation4], 4294967168 }
 0x114   :  { %145 = vsyncpa [#allocation3], 1 }
 0x115   :  { %146 = vsyncpa [#allocation6], 1 }
 0x116   :  { %147 = vsyncpa [#allocation4], 1 }

</bundles_post_ra>
